<compile_context>
chip_gen: v7x
topology: tpu7x:2x2x1
jax: 0.10.0
libtpu: 0.0.40
codegen_flags: <defaults>
</compile_context>

<pallas_src>
import jax
import jax.numpy as jnp
from jax.experimental import pallas as pl
from jax.experimental.pallas import tpu as pltpu

IN_FEATURES = 5    # ['Avg. Area Income', ..., 'Area Population']
OUT_FEATURES = 1   # ['Price']

LANE_TILE = 512    # lane-dense tile width over the batch axis (multiple of 128)


def _linear_kernel(params_ref, x_ref, o_ref):
    """params_ref: SMEM [O*F + O] f32 (row-major W, then b)
       x_ref:      VMEM [F, TN]  (batch on lanes)
       o_ref:      VMEM [O, TN]
    """
    f, _ = x_ref.shape
    o_rows, tn = o_ref.shape
    for j in range(o_rows):                                   # O == 1 here
        # bias broadcast, then 5 VPU FMAs with SMEM scalar weights.
        acc = jnp.full((1, tn), params_ref[o_rows * f + j], jnp.float32)
        for k in range(f):
            acc = acc + params_ref[j * f + k] * x_ref[pl.ds(k, 1), :]
        o_ref[pl.ds(j, 1), :] = acc.astype(o_ref.dtype)


def linear_forward(x, weight, bias, *, tile_n=LANE_TILE):
    """x: [N, F] f32, weight: [O, F] f32 (PyTorch layout), bias: [O] f32."""
    n, f = x.shape
    o = weight.shape[0]

    # Pad batch up to a multiple of the lane tile and put it on the lane axis.
    n_pad = ((n + tile_n - 1) // tile_n) * tile_n
    x_t = jnp.zeros((f, n_pad), x.dtype).at[:, :n].set(x.T)   # [F, N_pad]

    # Pack W (row-major) and b into one small SMEM-resident vector.
    params = jnp.concatenate(
        [weight.reshape(-1), bias.reshape(-1)]).astype(jnp.float32)

    y_t = pl.pallas_call(
        _linear_kernel,
        out_shape=jax.ShapeDtypeStruct((o, n_pad), x.dtype),
        grid=(n_pad // tile_n,),
        in_specs=[
            pl.BlockSpec(memory_space=pltpu.MemorySpace.SMEM),     # params
            pl.BlockSpec((f, tile_n), lambda i: (0, i)),           # x tile
        ],
        out_specs=pl.BlockSpec((o, tile_n), lambda i: (0, i)),
        compiler_params=pltpu.CompilerParams(
            dimension_semantics=("parallel",)),
    )(params, x_t)

    # Back to the PyTorch convention: [N, O].
    return y_t[:, :n].T


if __name__ == "__main__":
    key = jax.random.PRNGKey(0)
    kx, kw, kb = jax.random.split(key, 3)

    # Deterministic parameter init (mimicking nn.Linear's uniform init range).
    bound = 1.0 / (IN_FEATURES ** 0.5)
    weight = jax.random.uniform(
        kw, (OUT_FEATURES, IN_FEATURES), jnp.float32, -bound, bound)
    bias = jax.random.uniform(
        kb, (OUT_FEATURES,), jnp.float32, -bound, bound)

    # Batch chosen as a non-multiple of the lane tile to exercise padding and
    # a 2-step grid; input shape matches forward(x): [N, 5].
    batch = 1000
    x = jax.random.normal(kx, (batch, IN_FEATURES), jnp.float32)

    fwd = jax.jit(linear_forward)   # fuse transpose/pad/slice with the kernel
    y = jax.block_until_ready(fwd(x, weight, bias))

    # Reference check in plain JAX (same semantics as x @ W^T + b).
    y_ref = x @ weight.T + bias
    assert y.shape == (batch, OUT_FEATURES)
    assert jnp.allclose(y, y_ref, atol=1e-5, rtol=1e-5), \
        float(jnp.max(jnp.abs(y - y_ref)))

    print("KERNEL_OK")
</pallas_src>

<mosaic_0001>
module attributes {stable_mosaic.version = 11 : i64} {
  func.func @_linear_kernel(%arg0: i32, %arg1: memref<6xf32, #tpu.memory_space<smem>>, %arg2: memref<5x512xf32, #tpu.memory_space<vmem>>, %arg3: memref<1x512xf32, #tpu.memory_space<vmem>>) attributes {dimension_semantics = [#tpu.dimension_semantics<parallel>], iteration_bounds = array<i64: 2>, scalar_prefetch = 0 : i64, scratch_operands = 0 : i64, tpu.core_type = #tpu.core_type<tc>, window_params = [{transform_indices = @transform_0, window_bounds = array<i64: 6>}, {transform_indices = @transform_1, window_bounds = array<i64: 5, 512>}, {transform_indices = @transform_2, window_bounds = array<i64: 1, 512>}]} {
    %c5 = arith.constant 5 : index
    %0 = memref.load %arg1[%c5] : memref<6xf32, #tpu.memory_space<smem>>
    %1 = vector.broadcast %0 : f32 to vector<1x512xf32>
    %c0 = arith.constant 0 : index
    %2 = memref.load %arg1[%c0] : memref<6xf32, #tpu.memory_space<smem>>
    %c0_0 = arith.constant 0 : index
    %c0_1 = arith.constant 0 : index
    %3 = vector.load %arg2[%c0_0, %c0_1] : memref<5x512xf32, #tpu.memory_space<vmem>>, vector<1x512xf32>
    %4 = vector.broadcast %2 : f32 to vector<1x512xf32>
    %5 = arith.mulf %4, %3 : vector<1x512xf32>
    %6 = arith.addf %1, %5 : vector<1x512xf32>
    %c1 = arith.constant 1 : index
    %7 = memref.load %arg1[%c1] : memref<6xf32, #tpu.memory_space<smem>>
    %c1_2 = arith.constant 1 : index
    %c0_3 = arith.constant 0 : index
    %8 = vector.load %arg2[%c1_2, %c0_3] : memref<5x512xf32, #tpu.memory_space<vmem>>, vector<1x512xf32>
    %9 = vector.broadcast %7 : f32 to vector<1x512xf32>
    %10 = arith.mulf %9, %8 : vector<1x512xf32>
    %11 = arith.addf %6, %10 : vector<1x512xf32>
    %c2 = arith.constant 2 : index
    %12 = memref.load %arg1[%c2] : memref<6xf32, #tpu.memory_space<smem>>
    %c2_4 = arith.constant 2 : index
    %c0_5 = arith.constant 0 : index
    %13 = vector.load %arg2[%c2_4, %c0_5] : memref<5x512xf32, #tpu.memory_space<vmem>>, vector<1x512xf32>
    %14 = vector.broadcast %12 : f32 to vector<1x512xf32>
    %15 = arith.mulf %14, %13 : vector<1x512xf32>
    %16 = arith.addf %11, %15 : vector<1x512xf32>
    %c3 = arith.constant 3 : index
    %17 = memref.load %arg1[%c3] : memref<6xf32, #tpu.memory_space<smem>>
    %c3_6 = arith.constant 3 : index
    %c0_7 = arith.constant 0 : index
    %18 = vector.load %arg2[%c3_6, %c0_7] : memref<5x512xf32, #tpu.memory_space<vmem>>, vector<1x512xf32>
    %19 = vector.broadcast %17 : f32 to vector<1x512xf32>
    %20 = arith.mulf %19, %18 : vector<1x512xf32>
    %21 = arith.addf %16, %20 : vector<1x512xf32>
    %c4 = arith.constant 4 : index
    %22 = memref.load %arg1[%c4] : memref<6xf32, #tpu.memory_space<smem>>
    %c4_8 = arith.constant 4 : index
    %c0_9 = arith.constant 0 : index
    %23 = vector.load %arg2[%c4_8, %c0_9] : memref<5x512xf32, #tpu.memory_space<vmem>>, vector<1x512xf32>
    %24 = vector.broadcast %22 : f32 to vector<1x512xf32>
    %25 = arith.mulf %24, %23 : vector<1x512xf32>
    %26 = arith.addf %21, %25 : vector<1x512xf32>
    %c0_10 = arith.constant 0 : index
    %c0_11 = arith.constant 0 : index
    %27 = vector.load %arg3[%c0_10, %c0_11] : memref<1x512xf32, #tpu.memory_space<vmem>>, vector<1x512xf32>
    tpu.vector_store %arg3[%c0_10, %c0_11], %26 {strides = array<i32>} : memref<1x512xf32, #tpu.memory_space<vmem>>, vector<1x512xf32>,
    return
  }
  func.func @transform_0(%arg0: i32) -> i32 {
    %c0_i32 = arith.constant 0 : i32
    %c0_i32_0 = arith.constant 0 : i32
    return %c0_i32 : i32
  }
  func.func @transform_1(%arg0: i32) -> (i32, i32) {
    %c0_i32 = arith.constant 0 : i32
    %c0_i32_0 = arith.constant 0 : i32
    return %c0_i32, %arg0 : i32, i32
  }
  func.func @transform_2(%arg0: i32) -> (i32, i32) {
    %c0_i32 = arith.constant 0 : i32
    %c0_i32_0 = arith.constant 0 : i32
    return %c0_i32, %arg0 : i32, i32
  }
}

</mosaic_0001>

<bundles_post_ra>
// kernel: linear_forward.1
= control target key start
LH: loop header
LB: loop body
LE: loop exit
PB: predicated region body
PF: predicated region fallthrough
CT: control target
= control target key end

     0   :  { %7 = vsyncpa [#allocation3], 0  ;;  %s340_s9 = smov 0   ;;  %s382_s0 = inlined_call_operand.vmem [shape: f32[6], index: 0, kind: input, shape index: {}]   ;;  %s383_s1 = inlined_call_operand.vmem [shape: f32[5,1024], index: 1, kind: input, shape index: {}]   ;;  %s384_s2 = inlined_call_operand.vmem [shape: f32[1,1024], index: 2, kind: output, shape index: {}]  }
   0x1 LB: > { %s257_s10 = sadd.s32 4294967295, %s322_s9   ;;  %p259_p0 = scmp.ge.s32.totalorder %s322_s9, 1  ;;  %s322_s9 = sphi %s340_s9, %s13_s9  }
   0x2   : > { %p91_p1 = scmp.lt.s32.totalorder %s322_s9, 3  ;;  %s104_s13 = sshll.u32 %s382_s0, 4  ;;  %s105_s13 = int_to_ptr.vmem [resolvable:$true] %s104_s13 }
   0x3   : > { %p355_p3 = scmp.eq.s32.totalorder %s257_s10, 0  ;;  %s297_s16 = scalar_lea.vmem %s105_s13, 16 }
   0x4   : > { %p351_p2 = pnand %p259_p0, %p91_p1  ;;  %p298_p6 = scmp.ne.s32.totalorder %s105_s13, %s297_s16 }
   0x5   : > { %p305_p10 = scmp.lt.s32.totalorder %s105_s13, %s105_s13  ;;  %p306_p11 = scmp.lt.s32.totalorder %s297_s16, %s297_s16 }
   0x6   : > { %p282_p4 = pneg %p351_p2 }
   0x7   : > { %p307_p12 = por %p306_p11, %p305_p10 }
   0x8   : > { %p283_p5 = pnand %p355_p3, %p282_p4 }
   0xa   : > { %p299_p7 = pneg %p283_p5 }
   0xc   : > { %p300_p8 = pnand %p299_p7, %p298_p6 }
   0xe   : > { %p301_p9 = pneg %p300_p8 }
  0x10   : > { %p308_p13 = pnand %p307_p12, %p301_p9 }
  0x12   : > { %311 = shalt.err (!%p308_p13)
}
  0x13   : > { %s324_s17 = smov [#allocation2]   ;;  %126 = sbr.rel (%p351_p2) target bundleno = 50 (0x32), region = 28 }
  0x14   : > { %285 = dma.vmem_to_smem (!%p283_p5), %s105_s13, 16, %s324_s17, [#allocation3]  }
  0x1a   : > { %317 = dma.done.wait (%p355_p3), [#allocation3], 16  }
  0x1b   : > { %319 = vsyncadd (%p355_p3), [#allocation3], 4294967280 }
  0x1c   : > { %132 = sfence }
  0x1d   : > { %s264_s18 = sshll.u32 %s257_s10, 2  ;;  %s267_s19 = sld [smem:[#allocation2 + $0x5]]  ;;  %v190_v17 = vlaneseq }
  0x1e   : > { %p149_p0 = scmp.lt.s32.totalorder %s264_s18, 7  ;;  %s161_s20 = sld [smem:[#allocation2]] }
  0x1f   : > { %s268_s21 = sld [smem:[#allocation2 + $0x1]]  ;;  %s270_s22 = sld [smem:[#allocation2 + $0x2]]  ;;  %vm192_vm0 = vcmp.lt.s32.totalorder %v190_v17, 512 }
  0x20   : > { %s388_s18 = smov (!%p149_p0, %s264_s18), 7  ;;  %s272_s23 = sld [smem:[#allocation2 + $0x3]] }
  0x21   : > { %s274_s24 = sld [smem:[#allocation2 + $0x4]]  ;;  %s265_s25 = sshll.u32 %s388_s18, 3 }
  0x22   : > { %s152_s28 = scalar_lea.vmem %s383_s1, %s265_s25  ;;  %s157_s3 = scalar_lea.vmem %s384_s2, %s388_s18 }
  0x23   : > { %v160_v0 = vstv %s267_s19  ;;  %v162_v1 = vld [vmem:[%s152_s28] ss:$8 sm:$0xf]  ;;  %v269_v3 = vld [vmem:[%s152_s28 + $0x1] ss:$8 sm:$0xf] }
  0x24   : > { %v163_v2 = vstv %s161_s20  ;;  %v271_v6 = vld [vmem:[%s152_s28 + $0x2] ss:$8 sm:$0xf]  ;;  %v273_v9 = vld [vmem:[%s152_s28 + $0x3] ss:$8 sm:$0xf] }
  0x25   : > { %v164_v4 = vmul.f32 %v163_v2, %v162_v1  ;;  %v169_v5 = vstv %s268_s21  ;;  %v175_v7 = vstv %s270_s22  ;;  %v275_v13 = vld [vmem:[%s152_s28 + $0x4] ss:$8 sm:$0xf] }
  0x26   : > { %v170_v8 = vmul.f32 %v269_v3, %v169_v5  ;;  %v176_v11 = vmul.f32 %v271_v6, %v175_v7  ;;  %v181_v12 = vstv %s272_s23 }
  0x27   : > { %v165_v10 = vadd.f32 %v164_v4, %v160_v0  ;;  %v187_v14 = vstv %s274_s24  ;;  %v182_v16 = vmul.f32 %v273_v9, %v181_v12 }
  0x28   : > { %v188_v19 = vmul.f32 %v275_v13, %v187_v14 }
  0x29   : > { %v171_v15 = vadd.f32 %v170_v8, %v165_v10 }
  0x2b   : > { %v177_v18 = vadd.f32 %v176_v11, %v171_v15 }
  0x2d   : > { %v183_v20 = vadd.f32 %v182_v16, %v177_v18 }
  0x2f   : > { %v189_v21 = vadd.f32 %v188_v19, %v183_v20 }
  0x31   : > { %194 = vst.msk [vmem:[%s157_s3] sm:$0xf] %vm192_vm0, %v189_v21 }
  0x32 PF: > { %s13_s9 = sadd.s32 1, %s322_s9  }
  0x33   : > { %p10_p1 = scmp.ge.s32.totalorder %s13_s9, 4  }
  0x35   :  { %12 = sbr.rel (!%p10_p1) target bundleno = 1 (0x1), region = 67 }
  0x3c   :  { %215 = vsyncpa [#allocation3], 1 }
  0x3d   :  { %217 = vsyncpa [#allocation3 + $0x1], 1 }

</bundles_post_ra>
